<compile_context>
chip_gen: v6e
topology: v6e:2x2x1
jax: 0.10.0
libtpu: 0.0.40
codegen_flags: <defaults>
</compile_context>

<pallas_src>
import functools

import jax
import jax.numpy as jnp
from jax import lax
from jax.experimental import pallas as pl
from jax.experimental.pallas import tpu as pltpu


def _awe_kernel(ids_ref, emb_ref, out_ref, acc_ref, *, seq_len, num_rows):
    """Averaged word embeddings for one batch tile.

    ids_ref : SMEM (B*S,) int32 flattened token ids (scalar prefetch).
    emb_ref : VMEM (V, D) embedding table (single resident block).
    out_ref : VMEM (TB, D) output block for this batch tile.
    acc_ref : VMEM (TB, D) float32 accumulator scratch.
    """
    bt = pl.program_id(0)
    TB, D = out_ref.shape

    for r in range(TB):  # static unroll; TB is small
        # Clamp the batch row so a partial last tile re-reads row B-1; the
        # overhanging output rows are masked on writeback by Pallas.
        b_row = jnp.minimum(bt * TB + r, num_rows - 1)
        base = b_row * seq_len  # one scalar mul/add per row, not per token

        def body(s, acc, base=base):
            tok = ids_ref[base + s]                       # scalar SMEM read
            row = emb_ref[pl.ds(tok, 1), :]               # (1, D) VMEM gather
            return acc + row.astype(jnp.float32)

        acc_ref[pl.ds(r, 1), :] = lax.fori_loop(
            0, seq_len, body, jnp.zeros((1, D), jnp.float32), unroll=True)

    # Single lane-dense, sublane-full store; 1/S scale applied once at the end.
    out_ref[...] = (acc_ref[...] * (1.0 / seq_len)).astype(out_ref.dtype)


def awe_forward(x_ids, embedding, *, batch_tile=8):
    """x_ids: (B, S) integer ids, embedding: (V, D) float32 -> (B, D) float32."""
    B, S = x_ids.shape
    V, D = embedding.shape
    TB = min(batch_tile, B)          # raise for realistic B to amortize grid steps
    nb = pl.cdiv(B, TB)

    # VMEM budget check for the resident-table path (table is double-buffered
    # by the BlockSpec pipeline; out block double-buffered; + acc scratch).
    table_bytes = V * D * embedding.dtype.itemsize
    vmem_needed = 2 * table_bytes + 3 * TB * D * 4
    assert vmem_needed < 28 * 1024 * 1024, (
        "embedding table too large for the VMEM-resident path; "
        "use an HBM row-gather variant instead")

    # Hoisted id sanitation: clamp once here instead of per-(row, token) in the
    # kernel.  torch.nn.Embedding raises on out-of-range ids; we clamp instead.
    ids_flat = jnp.clip(x_ids.reshape(-1).astype(jnp.int32), 0, V - 1)

    kernel = functools.partial(_awe_kernel, seq_len=S, num_rows=B)

    grid_spec = pltpu.PrefetchScalarGridSpec(
        num_scalar_prefetch=1,                               # flattened ids -> SMEM
        grid=(nb,),                                          # batch tiles
        in_specs=[
            # Whole table as one VMEM-resident block (same block every step).
            pl.BlockSpec((V, D), lambda bt, ids: (0, 0)),
        ],
        out_specs=pl.BlockSpec((TB, D), lambda bt, ids: (bt, 0)),
        scratch_shapes=[pltpu.VMEM((TB, D), jnp.float32)],   # f32 accumulator
    )

    return pl.pallas_call(
        kernel,
        out_shape=jax.ShapeDtypeStruct((B, D), jnp.float32),
        grid_spec=grid_spec,
        compiler_params=pltpu.CompilerParams(
            dimension_semantics=("parallel",),   # batch tiles -> both v7x TCs
            vmem_limit_bytes=32 * 1024 * 1024,   # explicit; fits v5e/v6e/v7x
        ),
    )(ids_flat, embedding)


if __name__ == "__main__":
    # Small shapes consistent with the module's forward.  D is a multiple of
    # 128 (lane-dense output block); B = 2 sublane-full batch tiles of 8 so
    # the "parallel" grid axis splits evenly across v7x's two TensorCores.
    B, S = 16, 8          # batch, sequence length
    V, D = 128, 128       # input_size (vocab), embed_size

    key = jax.random.PRNGKey(0)
    k_ids, k_emb = jax.random.split(key)

    x_ids = jax.random.randint(k_ids, (B, S), 0, V, dtype=jnp.int32)
    # Deterministic "parameter init" for nn.Embedding(input_size, embed_size)
    embedding = jax.random.normal(k_emb, (V, D), dtype=jnp.float32)

    out = jax.block_until_ready(awe_forward(x_ids, embedding))

    # Pure-JAX reference: gather + mean over the sequence axis.
    ref = jnp.mean(embedding[x_ids], axis=1)
    assert out.shape == (B, D)
    assert jnp.allclose(out, ref, atol=1e-5, rtol=1e-5)

    print("KERNEL_OK")
</pallas_src>

<mosaic_0001>
module attributes {stable_mosaic.version = 11 : i64} {
  func.func @_awe_kernel(%arg0: i32, %arg1: memref<128xi32, #tpu.memory_space<smem>>, %arg2: memref<128x128xf32, #tpu.memory_space<vmem>>, %arg3: memref<8x128xf32, #tpu.memory_space<vmem>>, %arg4: memref<8x128xf32, #tpu.memory_space<vmem>>) attributes {dimension_semantics = [#tpu.dimension_semantics<parallel>], iteration_bounds = array<i64: 2>, scalar_prefetch = 1 : i64, scratch_operands = 1 : i64, tpu.core_type = #tpu.core_type<tc>, window_params = [{pipeline_mode = #tpu.pipeline_mode<synchronous>, transform_indices = @transform_0, window_bounds = array<i64: 128, 128>}, {transform_indices = @transform_1, window_bounds = array<i64: 8, 128>}]} {
    %c8_i32 = arith.constant 8 : i32
    %0 = arith.muli %arg0, %c8_i32 : i32
    %c0_i32 = arith.constant 0 : i32
    %1 = arith.addi %0, %c0_i32 : i32
    %c15_i32 = arith.constant 15 : i32
    %2 = arith.minsi %1, %c15_i32 : i32
    %c8_i32_0 = arith.constant 8 : i32
    %3 = arith.muli %2, %c8_i32_0 : i32
    %cst = arith.constant 0.000000e+00 : f32
    %4 = vector.broadcast %cst : f32 to vector<1x128xf32>
    %c0_i32_1 = arith.constant 0 : i32
    %5 = arith.addi %3, %c0_i32_1 : i32
    %6 = arith.index_cast %5 : i32 to index
    %7 = memref.load %arg1[%6] : memref<128xi32, #tpu.memory_space<smem>>
    %8 = arith.index_cast %7 : i32 to index
    %c0 = arith.constant 0 : index
    %9 = vector.load %arg2[%8, %c0] : memref<128x128xf32, #tpu.memory_space<vmem>>, vector<1x128xf32>
    %10 = arith.addf %4, %9 : vector<1x128xf32>
    %c1_i32 = arith.constant 1 : i32
    %11 = arith.addi %3, %c1_i32 : i32
    %12 = arith.index_cast %11 : i32 to index
    %13 = memref.load %arg1[%12] : memref<128xi32, #tpu.memory_space<smem>>
    %14 = arith.index_cast %13 : i32 to index
    %c0_2 = arith.constant 0 : index
    %15 = vector.load %arg2[%14, %c0_2] : memref<128x128xf32, #tpu.memory_space<vmem>>, vector<1x128xf32>
    %16 = arith.addf %10, %15 : vector<1x128xf32>
    %c2_i32 = arith.constant 2 : i32
    %17 = arith.addi %3, %c2_i32 : i32
    %18 = arith.index_cast %17 : i32 to index
    %19 = memref.load %arg1[%18] : memref<128xi32, #tpu.memory_space<smem>>
    %20 = arith.index_cast %19 : i32 to index
    %c0_3 = arith.constant 0 : index
    %21 = vector.load %arg2[%20, %c0_3] : memref<128x128xf32, #tpu.memory_space<vmem>>, vector<1x128xf32>
    %22 = arith.addf %16, %21 : vector<1x128xf32>
    %c3_i32 = arith.constant 3 : i32
    %23 = arith.addi %3, %c3_i32 : i32
    %24 = arith.index_cast %23 : i32 to index
    %25 = memref.load %arg1[%24] : memref<128xi32, #tpu.memory_space<smem>>
    %26 = arith.index_cast %25 : i32 to index
    %c0_4 = arith.constant 0 : index
    %27 = vector.load %arg2[%26, %c0_4] : memref<128x128xf32, #tpu.memory_space<vmem>>, vector<1x128xf32>
    %28 = arith.addf %22, %27 : vector<1x128xf32>
    %c4_i32 = arith.constant 4 : i32
    %29 = arith.addi %3, %c4_i32 : i32
    %30 = arith.index_cast %29 : i32 to index
    %31 = memref.load %arg1[%30] : memref<128xi32, #tpu.memory_space<smem>>
    %32 = arith.index_cast %31 : i32 to index
    %c0_5 = arith.constant 0 : index
    %33 = vector.load %arg2[%32, %c0_5] : memref<128x128xf32, #tpu.memory_space<vmem>>, vector<1x128xf32>
    %34 = arith.addf %28, %33 : vector<1x128xf32>
    %c5_i32 = arith.constant 5 : i32
    %35 = arith.addi %3, %c5_i32 : i32
    %36 = arith.index_cast %35 : i32 to index
    %37 = memref.load %arg1[%36] : memref<128xi32, #tpu.memory_space<smem>>
    %38 = arith.index_cast %37 : i32 to index
    %c0_6 = arith.constant 0 : index
    %39 = vector.load %arg2[%38, %c0_6] : memref<128x128xf32, #tpu.memory_space<vmem>>, vector<1x128xf32>
    %40 = arith.addf %34, %39 : vector<1x128xf32>
    %c6_i32 = arith.constant 6 : i32
    %41 = arith.addi %3, %c6_i32 : i32
    %42 = arith.index_cast %41 : i32 to index
    %43 = memref.load %arg1[%42] : memref<128xi32, #tpu.memory_space<smem>>
    %44 = arith.index_cast %43 : i32 to index
    %c0_7 = arith.constant 0 : index
    %45 = vector.load %arg2[%44, %c0_7] : memref<128x128xf32, #tpu.memory_space<vmem>>, vector<1x128xf32>
    %46 = arith.addf %40, %45 : vector<1x128xf32>
    %c7_i32 = arith.constant 7 : i32
    %47 = arith.addi %3, %c7_i32 : i32
    %48 = arith.index_cast %47 : i32 to index
    %49 = memref.load %arg1[%48] : memref<128xi32, #tpu.memory_space<smem>>
    %50 = arith.index_cast %49 : i32 to index
    %c0_8 = arith.constant 0 : index
    %51 = vector.load %arg2[%50, %c0_8] : memref<128x128xf32, #tpu.memory_space<vmem>>, vector<1x128xf32>
    %52 = arith.addf %46, %51 : vector<1x128xf32>
    %c8_i32_9 = arith.constant 8 : i32
    %c0_10 = arith.constant 0 : index
    %c0_11 = arith.constant 0 : index
    %53 = vector.load %arg4[%c0_10, %c0_11] : memref<8x128xf32, #tpu.memory_space<vmem>>, vector<1x128xf32>
    tpu.vector_store %arg4[%c0_10, %c0_11], %52 {strides = array<i32>} : memref<8x128xf32, #tpu.memory_space<vmem>>, vector<1x128xf32>,
    %c8_i32_12 = arith.constant 8 : i32
    %54 = arith.muli %arg0, %c8_i32_12 : i32
    %c1_i32_13 = arith.constant 1 : i32
    %55 = arith.addi %54, %c1_i32_13 : i32
    %c15_i32_14 = arith.constant 15 : i32
    %56 = arith.minsi %55, %c15_i32_14 : i32
    %c8_i32_15 = arith.constant 8 : i32
    %57 = arith.muli %56, %c8_i32_15 : i32
    %cst_16 = arith.constant 0.000000e+00 : f32
    %58 = vector.broadcast %cst_16 : f32 to vector<1x128xf32>
    %c0_i32_17 = arith.constant 0 : i32
    %59 = arith.addi %57, %c0_i32_17 : i32
    %60 = arith.index_cast %59 : i32 to index
    %61 = memref.load %arg1[%60] : memref<128xi32, #tpu.memory_space<smem>>
    %62 = arith.index_cast %61 : i32 to index
    %c0_18 = arith.constant 0 : index
    %63 = vector.load %arg2[%62, %c0_18] : memref<128x128xf32, #tpu.memory_space<vmem>>, vector<1x128xf32>
    %64 = arith.addf %58, %63 : vector<1x128xf32>
    %c1_i32_19 = arith.constant 1 : i32
    %65 = arith.addi %57, %c1_i32_19 : i32
    %66 = arith.index_cast %65 : i32 to index
    %67 = memref.load %arg1[%66] : memref<128xi32, #tpu.memory_space<smem>>
    %68 = arith.index_cast %67 : i32 to index
    %c0_20 = arith.constant 0 : index
    %69 = vector.load %arg2[%68, %c0_20] : memref<128x128xf32, #tpu.memory_space<vmem>>, vector<1x128xf32>
    %70 = arith.addf %64, %69 : vector<1x128xf32>
    %c2_i32_21 = arith.constant 2 : i32
    %71 = arith.addi %57, %c2_i32_21 : i32
    %72 = arith.index_cast %71 : i32 to index
    %73 = memref.load %arg1[%72] : memref<128xi32, #tpu.memory_space<smem>>
    %74 = arith.index_cast %73 : i32 to index
    %c0_22 = arith.constant 0 : index
    %75 = vector.load %arg2[%74, %c0_22] : memref<128x128xf32, #tpu.memory_space<vmem>>, vector<1x128xf32>
    %76 = arith.addf %70, %75 : vector<1x128xf32>
    %c3_i32_23 = arith.constant 3 : i32
    %77 = arith.addi %57, %c3_i32_23 : i32
    %78 = arith.index_cast %77 : i32 to index
    %79 = memref.load %arg1[%78] : memref<128xi32, #tpu.memory_space<smem>>
    %80 = arith.index_cast %79 : i32 to index
    %c0_24 = arith.constant 0 : index
    %81 = vector.load %arg2[%80, %c0_24] : memref<128x128xf32, #tpu.memory_space<vmem>>, vector<1x128xf32>
    %82 = arith.addf %76, %81 : vector<1x128xf32>
    %c4_i32_25 = arith.constant 4 : i32
    %83 = arith.addi %57, %c4_i32_25 : i32
    %84 = arith.index_cast %83 : i32 to index
    %85 = memref.load %arg1[%84] : memref<128xi32, #tpu.memory_space<smem>>
    %86 = arith.index_cast %85 : i32 to index
    %c0_26 = arith.constant 0 : index
    %87 = vector.load %arg2[%86, %c0_26] : memref<128x128xf32, #tpu.memory_space<vmem>>, vector<1x128xf32>
    %88 = arith.addf %82, %87 : vector<1x128xf32>
    %c5_i32_27 = arith.constant 5 : i32
    %89 = arith.addi %57, %c5_i32_27 : i32
    %90 = arith.index_cast %89 : i32 to index
    %91 = memref.load %arg1[%90] : memref<128xi32, #tpu.memory_space<smem>>
    %92 = arith.index_cast %91 : i32 to index
    %c0_28 = arith.constant 0 : index
    %93 = vector.load %arg2[%92, %c0_28] : memref<128x128xf32, #tpu.memory_space<vmem>>, vector<1x128xf32>
    %94 = arith.addf %88, %93 : vector<1x128xf32>
    %c6_i32_29 = arith.constant 6 : i32
    %95 = arith.addi %57, %c6_i32_29 : i32
    %96 = arith.index_cast %95 : i32 to index
    %97 = memref.load %arg1[%96] : memref<128xi32, #tpu.memory_space<smem>>
    %98 = arith.index_cast %97 : i32 to index
    %c0_30 = arith.constant 0 : index
    %99 = vector.load %arg2[%98, %c0_30] : memref<128x128xf32, #tpu.memory_space<vmem>>, vector<1x128xf32>
    %100 = arith.addf %94, %99 : vector<1x128xf32>
    %c7_i32_31 = arith.constant 7 : i32
    %101 = arith.addi %57, %c7_i32_31 : i32
    %102 = arith.index_cast %101 : i32 to index
    %103 = memref.load %arg1[%102] : memref<128xi32, #tpu.memory_space<smem>>
    %104 = arith.index_cast %103 : i32 to index
    %c0_32 = arith.constant 0 : index
    %105 = vector.load %arg2[%104, %c0_32] : memref<128x128xf32, #tpu.memory_space<vmem>>, vector<1x128xf32>
    %106 = arith.addf %100, %105 : vector<1x128xf32>
    %c8_i32_33 = arith.constant 8 : i32
    %c1 = arith.constant 1 : index
    %c0_34 = arith.constant 0 : index
    %107 = vector.load %arg4[%c1, %c0_34] : memref<8x128xf32, #tpu.memory_space<vmem>>, vector<1x128xf32>
    tpu.vector_store %arg4[%c1, %c0_34], %106 {strides = array<i32>} : memref<8x128xf32, #tpu.memory_space<vmem>>, vector<1x128xf32>,
    %c8_i32_35 = arith.constant 8 : i32
    %108 = arith.muli %arg0, %c8_i32_35 : i32
    %c2_i32_36 = arith.constant 2 : i32
    %109 = arith.addi %108, %c2_i32_36 : i32
    %c15_i32_37 = arith.constant 15 : i32
    %110 = arith.minsi %109, %c15_i32_37 : i32
    %c8_i32_38 = arith.constant 8 : i32
    %111 = arith.muli %110, %c8_i32_38 : i32
    %cst_39 = arith.constant 0.000000e+00 : f32
    %112 = vector.broadcast %cst_39 : f32 to vector<1x128xf32>
    %c0_i32_40 = arith.constant 0 : i32
    %113 = arith.addi %111, %c0_i32_40 : i32
    %114 = arith.index_cast %113 : i32 to index
    %115 = memref.load %arg1[%114] : memref<128xi32, #tpu.memory_space<smem>>
    %116 = arith.index_cast %115 : i32 to index
    %c0_41 = arith.constant 0 : index
    %117 = vector.load %arg2[%116, %c0_41] : memref<128x128xf32, #tpu.memory_space<vmem>>, vector<1x128xf32>
    %118 = arith.addf %112, %117 : vector<1x128xf32>
    %c1_i32_42 = arith.constant 1 : i32
    %119 = arith.addi %111, %c1_i32_42 : i32
    %120 = arith.index_cast %119 : i32 to index
    %121 = memref.load %arg1[%120] : memref<128xi32, #tpu.memory_space<smem>>
    %122 = arith.index_cast %121 : i32 to index
    %c0_43 = arith.constant 0 : index
    %123 = vector.load %arg2[%122, %c0_43] : memref<128x128xf32, #tpu.memory_space<vmem>>, vector<1x128xf32>
    %124 = arith.addf %118, %123 : vector<1x128xf32>
    %c2_i32_44 = arith.constant 2 : i32
    %125 = arith.addi %111, %c2_i32_44 : i32
    %126 = arith.index_cast %125 : i32 to index
    %127 = memref.load %arg1[%126] : memref<128xi32, #tpu.memory_space<smem>>
    %128 = arith.index_cast %127 : i32 to index
    %c0_45 = arith.constant 0 : index
    %129 = vector.load %arg2[%128, %c0_45] : memref<128x128xf32, #tpu.memory_space<vmem>>, vector<1x128xf32>
    %130 = arith.addf %124, %129 : vector<1x128xf32>
    %c3_i32_46 = arith.constant 3 : i32
    %131 = arith.addi %111, %c3_i32_46 : i32
    %132 = arith.index_cast %131 : i32 to index
    %133 = memref.load %arg1[%132] : memref<128xi32, #tpu.memory_space<smem>>
    %134 = arith.index_cast %133 : i32 to index
    %c0_47 = arith.constant 0 : index
    %135 = vector.load %arg2[%134, %c0_47] : memref<128x128xf32, #tpu.memory_space<vmem>>, vector<1x128xf32>
    %136 = arith.addf %130, %135 : vector<1x128xf32>
    %c4_i32_48 = arith.constant 4 : i32
    %137 = arith.addi %111, %c4_i32_48 : i32
    %138 = arith.index_cast %137 : i32 to index
    %139 = memref.load %arg1[%138] : memref<128xi32, #tpu.memory_space<smem>>
    %140 = arith.index_cast %139 : i32 to index
    %c0_49 = arith.constant 0 : index
    %141 = vector.load %arg2[%140, %c0_49] : memref<128x128xf32, #tpu.memory_space<vmem>>, vector<1x128xf32>
    %142 = arith.addf %136, %141 : vector<1x128xf32>
    %c5_i32_50 = arith.constant 5 : i32
    %143 = arith.addi %111, %c5_i32_50 : i32
    %144 = arith.index_cast %143 : i32 to index
    %145 = memref.load %arg1[%144] : memref<128xi32, #tpu.memory_space<smem>>
    %146 = arith.index_cast %145 : i32 to index
    %c0_51 = arith.constant 0 : index
    %147 = vector.load %arg2[%146, %c0_51] : memref<128x128xf32, #tpu.memory_space<vmem>>, vector<1x128xf32>
    %148 = arith.addf %142, %147 : vector<1x128xf32>
    %c6_i32_52 = arith.constant 6 : i32
    %149 = arith.addi %111, %c6_i32_52 : i32
    %150 = arith.index_cast %149 : i32 to index
    %151 = memref.load %arg1[%150] : memref<128xi32, #tpu.memory_space<smem>>
    %152 = arith.index_cast %151 : i32 to index
    %c0_53 = arith.constant 0 : index
    %153 = vector.load %arg2[%152, %c0_53] : memref<128x128xf32, #tpu.memory_space<vmem>>, vector<1x128xf32>
    %154 = arith.addf %148, %153 : vector<1x128xf32>
    %c7_i32_54 = arith.constant 7 : i32
    %155 = arith.addi %111, %c7_i32_54 : i32
    %156 = arith.index_cast %155 : i32 to index
    %157 = memref.load %arg1[%156] : memref<128xi32, #tpu.memory_space<smem>>
    %158 = arith.index_cast %157 : i32 to index
    %c0_55 = arith.constant 0 : index
    %159 = vector.load %arg2[%158, %c0_55] : memref<128x128xf32, #tpu.memory_space<vmem>>, vector<1x128xf32>
    %160 = arith.addf %154, %159 : vector<1x128xf32>
    %c8_i32_56 = arith.constant 8 : i32
    %c2 = arith.constant 2 : index
    %c0_57 = arith.constant 0 : index
    %161 = vector.load %arg4[%c2, %c0_57] : memref<8x128xf32, #tpu.memory_space<vmem>>, vector<1x128xf32>
    tpu.vector_store %arg4[%c2, %c0_57], %160 {strides = array<i32>} : memref<8x128xf32, #tpu.memory_space<vmem>>, vector<1x128xf32>,
    %c8_i32_58 = arith.constant 8 : i32
    %162 = arith.muli %arg0, %c8_i32_58 : i32
    %c3_i32_59 = arith.constant 3 : i32
    %163 = arith.addi %162, %c3_i32_59 : i32
    %c15_i32_60 = arith.constant 15 : i32
    %164 = arith.minsi %163, %c15_i32_60 : i32
    %c8_i32_61 = arith.constant 8 : i32
    %165 = arith.muli %164, %c8_i32_61 : i32
    %cst_62 = arith.constant 0.000000e+00 : f32
    %166 = vector.broadcast %cst_62 : f32 to vector<1x128xf32>
    %c0_i32_63 = arith.constant 0 : i32
    %167 = arith.addi %165, %c0_i32_63 : i32
    %168 = arith.index_cast %167 : i32 to index
    %169 = memref.load %arg1[%168] : memref<128xi32, #tpu.memory_space<smem>>
    %170 = arith.index_cast %169 : i32 to index
    %c0_64 = arith.constant 0 : index
    %171 = vector.load %arg2[%170, %c0_64] : memref<128x128xf32, #tpu.memory_space<vmem>>, vector<1x128xf32>
    %172 = arith.addf %166, %171 : vector<1x128xf32>
    %c1_i32_65 = arith.constant 1 : i32
    %173 = arith.addi %165, %c1_i32_65 : i32
    %174 = arith.index_cast %173 : i32 to index
    %175 = memref.load %arg1[%174] : memref<128xi32, #tpu.memory_space<smem>>
    %176 = arith.index_cast %175 : i32 to index
    %c0_66 = arith.constant 0 : index
    %177 = vector.load %arg2[%176, %c0_66] : memref<128x128xf32, #tpu.memory_space<vmem>>, vector<1x128xf32>
    %178 = arith.addf %172, %177 : vector<1x128xf32>
    %c2_i32_67 = arith.constant 2 : i32
    %179 = arith.addi %165, %c2_i32_67 : i32
    %180 = arith.index_cast %179 : i32 to index
    %181 = memref.load %arg1[%180] : memref<128xi32, #tpu.memory_space<smem>>
    %182 = arith.index_cast %181 : i32 to index
    %c0_68 = arith.constant 0 : index
    %183 = vector.load %arg2[%182, %c0_68] : memref<128x128xf32, #tpu.memory_space<vmem>>, vector<1x128xf32>
    %184 = arith.addf %178, %183 : vector<1x128xf32>
    %c3_i32_69 = arith.constant 3 : i32
    %185 = arith.addi %165, %c3_i32_69 : i32
    %186 = arith.index_cast %185 : i32 to index
    %187 = memref.load %arg1[%186] : memref<128xi32, #tpu.memory_space<smem>>
    %188 = arith.index_cast %187 : i32 to index
    %c0_70 = arith.constant 0 : index
    %189 = vector.load %arg2[%188, %c0_70] : memref<128x128xf32, #tpu.memory_space<vmem>>, vector<1x128xf32>
    %190 = arith.addf %184, %189 : vector<1x128xf32>
    %c4_i32_71 = arith.constant 4 : i32
    %191 = arith.addi %165, %c4_i32_71 : i32
    %192 = arith.index_cast %191 : i32 to index
    %193 = memref.load %arg1[%192] : memref<128xi32, #tpu.memory_space<smem>>
    %194 = arith.index_cast %193 : i32 to index
    %c0_72 = arith.constant 0 : index
    %195 = vector.load %arg2[%194, %c0_72] : memref<128x128xf32, #tpu.memory_space<vmem>>, vector<1x128xf32>
    %196 = arith.addf %190, %195 : vector<1x128xf32>
    %c5_i32_73 = arith.constant 5 : i32
    %197 = arith.addi %165, %c5_i32_73 : i32
    %198 = arith.index_cast %197 : i32 to index
    %199 = memref.load %arg1[%198] : memref<128xi32, #tpu.memory_space<smem>>
    %200 = arith.index_cast %199 : i32 to index
    %c0_74 = arith.constant 0 : index
    %201 = vector.load %arg2[%200, %c0_74] : memref<128x128xf32, #tpu.memory_space<vmem>>, vector<1x128xf32>
    %202 = arith.addf %196, %201 : vector<1x128xf32>
    %c6_i32_75 = arith.constant 6 : i32
    %203 = arith.addi %165, %c6_i32_75 : i32
    %204 = arith.index_cast %203 : i32 to index
    %205 = memref.load %arg1[%204] : memref<128xi32, #tpu.memory_space<smem>>
    %206 = arith.index_cast %205 : i32 to index
    %c0_76 = arith.constant 0 : index
    %207 = vector.load %arg2[%206, %c0_76] : memref<128x128xf32, #tpu.memory_space<vmem>>, vector<1x128xf32>
    %208 = arith.addf %202, %207 : vector<1x128xf32>
    %c7_i32_77 = arith.constant 7 : i32
    %209 = arith.addi %165, %c7_i32_77 : i32
    %210 = arith.index_cast %209 : i32 to index
    %211 = memref.load %arg1[%210] : memref<128xi32, #tpu.memory_space<smem>>
    %212 = arith.index_cast %211 : i32 to index
    %c0_78 = arith.constant 0 : index
    %213 = vector.load %arg2[%212, %c0_78] : memref<128x128xf32, #tpu.memory_space<vmem>>, vector<1x128xf32>
    %214 = arith.addf %208, %213 : vector<1x128xf32>
    %c8_i32_79 = arith.constant 8 : i32
    %c3 = arith.constant 3 : index
    %c0_80 = arith.constant 0 : index
    %215 = vector.load %arg4[%c3, %c0_80] : memref<8x128xf32, #tpu.memory_space<vmem>>, vector<1x128xf32>
    tpu.vector_store %arg4[%c3, %c0_80], %214 {strides = array<i32>} : memref<8x128xf32, #tpu.memory_space<vmem>>, vector<1x128xf32>,
    %c8_i32_81 = arith.constant 8 : i32
    %216 = arith.muli %arg0, %c8_i32_81 : i32
    %c4_i32_82 = arith.constant 4 : i32
    %217 = arith.addi %216, %c4_i32_82 : i32
    %c15_i32_83 = arith.constant 15 : i32
    %218 = arith.minsi %217, %c15_i32_83 : i32
    %c8_i32_84 = arith.constant 8 : i32
    %219 = arith.muli %218, %c8_i32_84 : i32
    %cst_85 = arith.constant 0.000000e+00 : f32
    %220 = vector.broadcast %cst_85 : f32 to vector<1x128xf32>
    %c0_i32_86 = arith.constant 0 : i32
    %221 = arith.addi %219, %c0_i32_86 : i32
    %222 = arith.index_cast %221 : i32 to index
    %223 = memref.load %arg1[%222] : memref<128xi32, #tpu.memory_space<smem>>
    %224 = arith.index_cast %223 : i32 to index
    %c0_87 = arith.constant 0 : index
    %225 = vector.load %arg2[%224, %c0_87] : memref<128x128xf32, #tpu.memory_space<vmem>>, vector<1x128xf32>
    %226 = arith.addf %220, %225 : vector<1x128xf32>
    %c1_i32_88 = arith.constant 1 : i32
    %227 = arith.addi %219, %c1_i32_88 : i32
    %228 = arith.index_cast %227 : i32 to index
    %229 = memref.load %arg1[%228] : memref<128xi32, #tpu.memory_space<smem>>
    %230 = arith.index_cast %229 : i32 to index
    %c0_89 = arith.constant 0 : index
    %231 = vector.load %arg2[%230, %c0_89] : memref<128x128xf32, #tpu.memory_space<vmem>>, vector<1x128xf32>
    %232 = arith.addf %226, %231 : vector<1x128xf32>
    %c2_i32_90 = arith.constant 2 : i32
    %233 = arith.addi %219, %c2_i32_90 : i32
    %234 = arith.index_cast %233 : i32 to index
    %235 = memref.load %arg1[%234] : memref<128xi32, #tpu.memory_space<smem>>
    %236 = arith.index_cast %235 : i32 to index
    %c0_91 = arith.constant 0 : index
    %237 = vector.load %arg2[%236, %c0_91] : memref<128x128xf32, #tpu.memory_space<vmem>>, vector<1x128xf32>
    %238 = arith.addf %232, %237 : vector<1x128xf32>
    %c3_i32_92 = arith.constant 3 : i32
    %239 = arith.addi %219, %c3_i32_92 : i32
    %240 = arith.index_cast %239 : i32 to index
    %241 = memref.load %arg1[%240] : memref<128xi32, #tpu.memory_space<smem>>
    %242 = arith.index_cast %241 : i32 to index
    %c0_93 = arith.constant 0 : index
    %243 = vector.load %arg2[%242, %c0_93] : memref<128x128xf32, #tpu.memory_space<vmem>>, vector<1x128xf32>
    %244 = arith.addf %238, %243 : vector<1x128xf32>
    %c4_i32_94 = arith.constant 4 : i32
    %245 = arith.addi %219, %c4_i32_94 : i32
    %246 = arith.index_cast %245 : i32 to index
    %247 = memref.load %arg1[%246] : memref<128xi32, #tpu.memory_space<smem>>
    %248 = arith.index_cast %247 : i32 to index
    %c0_95 = arith.constant 0 : index
    %249 = vector.load %arg2[%248, %c0_95] : memref<128x128xf32, #tpu.memory_space<vmem>>, vector<1x128xf32>
    %250 = arith.addf %244, %249 : vector<1x128xf32>
    %c5_i32_96 = arith.constant 5 : i32
    %251 = arith.addi %219, %c5_i32_96 : i32
    %252 = arith.index_cast %251 : i32 to index
    %253 = memref.load %arg1[%252] : memref<128xi32, #tpu.memory_space<smem>>
    %254 = arith.index_cast %253 : i32 to index
    %c0_97 = arith.constant 0 : index
    %255 = vector.load %arg2[%254, %c0_97] : memref<128x128xf32, #tpu.memory_space<vmem>>, vector<1x128xf32>
    %256 = arith.addf %250, %255 : vector<1x128xf32>
    %c6_i32_98 = arith.constant 6 : i32
    %257 = arith.addi %219, %c6_i32_98 : i32
    %258 = arith.index_cast %257 : i32 to index
    %259 = memref.load %arg1[%258] : memref<128xi32, #tpu.memory_space<smem>>
    %260 = arith.index_cast %259 : i32 to index
    %c0_99 = arith.constant 0 : index
    %261 = vector.load %arg2[%260, %c0_99] : memref<128x128xf32, #tpu.memory_space<vmem>>, vector<1x128xf32>
    %262 = arith.addf %256, %261 : vector<1x128xf32>
    %c7_i32_100 = arith.constant 7 : i32
    %263 = arith.addi %219, %c7_i32_100 : i32
    %264 = arith.index_cast %263 : i32 to index
    %265 = memref.load %arg1[%264] : memref<128xi32, #tpu.memory_space<smem>>
    %266 = arith.index_cast %265 : i32 to index
    %c0_101 = arith.constant 0 : index
    %267 = vector.load %arg2[%266, %c0_101] : memref<128x128xf32, #tpu.memory_space<vmem>>, vector<1x128xf32>
    %268 = arith.addf %262, %267 : vector<1x128xf32>
    %c8_i32_102 = arith.constant 8 : i32
    %c4 = arith.constant 4 : index
    %c0_103 = arith.constant 0 : index
    %269 = vector.load %arg4[%c4, %c0_103] : memref<8x128xf32, #tpu.memory_space<vmem>>, vector<1x128xf32>
    tpu.vector_store %arg4[%c4, %c0_103], %268 {strides = array<i32>} : memref<8x128xf32, #tpu.memory_space<vmem>>, vector<1x128xf32>,
    %c8_i32_104 = arith.constant 8 : i32
    %270 = arith.muli %arg0, %c8_i32_104 : i32
    %c5_i32_105 = arith.constant 5 : i32
    %271 = arith.addi %270, %c5_i32_105 : i32
    %c15_i32_106 = arith.constant 15 : i32
    %272 = arith.minsi %271, %c15_i32_106 : i32
    %c8_i32_107 = arith.constant 8 : i32
    %273 = arith.muli %272, %c8_i32_107 : i32
    %cst_108 = arith.constant 0.000000e+00 : f32
    %274 = vector.broadcast %cst_108 : f32 to vector<1x128xf32>
    %c0_i32_109 = arith.constant 0 : i32
    %275 = arith.addi %273, %c0_i32_109 : i32
    %276 = arith.index_cast %275 : i32 to index
    %277 = memref.load %arg1[%276] : memref<128xi32, #tpu.memory_space<smem>>
    %278 = arith.index_cast %277 : i32 to index
    %c0_110 = arith.constant 0 : index
    %279 = vector.load %arg2[%278, %c0_110] : memref<128x128xf32, #tpu.memory_space<vmem>>, vector<1x128xf32>
    %280 = arith.addf %274, %279 : vector<1x128xf32>
    %c1_i32_111 = arith.constant 1 : i32
    %281 = arith.addi %273, %c1_i32_111 : i32
    %282 = arith.index_cast %281 : i32 to index
    %283 = memref.load %arg1[%282] : memref<128xi32, #tpu.memory_space<smem>>
    %284 = arith.index_cast %283 : i32 to index
    %c0_112 = arith.constant 0 : index
    %285 = vector.load %arg2[%284, %c0_112] : memref<128x128xf32, #tpu.memory_space<vmem>>, vector<1x128xf32>
    %286 = arith.addf %280, %285 : vector<1x128xf32>
    %c2_i32_113 = arith.constant 2 : i32
    %287 = arith.addi %273, %c2_i32_113 : i32
    %288 = arith.index_cast %287 : i32 to index
    %289 = memref.load %arg1[%288] : memref<128xi32, #tpu.memory_space<smem>>
    %290 = arith.index_cast %289 : i32 to index
    %c0_114 = arith.constant 0 : index
    %291 = vector.load %arg2[%290, %c0_114] : memref<128x128xf32, #tpu.memory_space<vmem>>, vector<1x128xf32>
    %292 = arith.addf %286, %291 : vector<1x128xf32>
    %c3_i32_115 = arith.constant 3 : i32
    %293 = arith.addi %273, %c3_i32_115 : i32
    %294 = arith.index_cast %293 : i32 to index
    %295 = memref.load %arg1[%294] : memref<128xi32, #tpu.memory_space<smem>>
    %296 = arith.index_cast %295 : i32 to index
    %c0_116 = arith.constant 0 : index
    %297 = vector.load %arg2[%296, %c0_116] : memref<128x128xf32, #tpu.memory_space<vmem>>, vector<1x128xf32>
    %298 = arith.addf %292, %297 : vector<1x128xf32>
    %c4_i32_117 = arith.constant 4 : i32
    %299 = arith.addi %273, %c4_i32_117 : i32
    %300 = arith.index_cast %299 : i32 to index
    %301 = memref.load %arg1[%300] : memref<128xi32, #tpu.memory_space<smem>>
    %302 = arith.index_cast %301 : i32 to index
    %c0_118 = arith.constant 0 : index
    %303 = vector.load %arg2[%302, %c0_118] : memref<128x128xf32, #tpu.memory_space<vmem>>, vector<1x128xf32>
    %304 = arith.addf %298, %303 : vector<1x128xf32>
    %c5_i32_119 = arith.constant 5 : i32
    %305 = arith.addi %273, %c5_i32_119 : i32
    %306 = arith.index_cast %305 : i32 to index
    %307 = memref.load %arg1[%306] : memref<128xi32, #tpu.memory_space<smem>>
    %308 = arith.index_cast %307 : i32 to index
    %c0_120 = arith.constant 0 : index
    %309 = vector.load %arg2[%308, %c0_120] : memref<128x128xf32, #tpu.memory_space<vmem>>, vector<1x128xf32>
    %310 = arith.addf %304, %309 : vector<1x128xf32>
    %c6_i32_121 = arith.constant 6 : i32
    %311 = arith.addi %273, %c6_i32_121 : i32
    %312 = arith.index_cast %311 : i32 to index
    %313 = memref.load %arg1[%312] : memref<128xi32, #tpu.memory_space<smem>>
    %314 = arith.index_cast %313 : i32 to index
    %c0_122 = arith.constant 0 : index
    %315 = vector.load %arg2[%314, %c0_122] : memref<128x128xf32, #tpu.memory_space<vmem>>, vector<1x128xf32>
    %316 = arith.addf %310, %315 : vector<1x128xf32>
    %c7_i32_123 = arith.constant 7 : i32
    %317 = arith.addi %273, %c7_i32_123 : i32
    %318 = arith.index_cast %317 : i32 to index
    %319 = memref.load %arg1[%318] : memref<128xi32, #tpu.memory_space<smem>>
    %320 = arith.index_cast %319 : i32 to index
    %c0_124 = arith.constant 0 : index
    %321 = vector.load %arg2[%320, %c0_124] : memref<128x128xf32, #tpu.memory_space<vmem>>, vector<1x128xf32>
    %322 = arith.addf %316, %321 : vector<1x128xf32>
    %c8_i32_125 = arith.constant 8 : i32
    %c5 = arith.constant 5 : index
    %c0_126 = arith.constant 0 : index
    %323 = vector.load %arg4[%c5, %c0_126] : memref<8x128xf32, #tpu.memory_space<vmem>>, vector<1x128xf32>
    tpu.vector_store %arg4[%c5, %c0_126], %322 {strides = array<i32>} : memref<8x128xf32, #tpu.memory_space<vmem>>, vector<1x128xf32>,
    %c8_i32_127 = arith.constant 8 : i32
    %324 = arith.muli %arg0, %c8_i32_127 : i32
    %c6_i32_128 = arith.constant 6 : i32
    %325 = arith.addi %324, %c6_i32_128 : i32
    %c15_i32_129 = arith.constant 15 : i32
    %326 = arith.minsi %325, %c15_i32_129 : i32
    %c8_i32_130 = arith.constant 8 : i32
    %327 = arith.muli %326, %c8_i32_130 : i32
    %cst_131 = arith.constant 0.000000e+00 : f32
    %328 = vector.broadcast %cst_131 : f32 to vector<1x128xf32>
    %c0_i32_132 = arith.constant 0 : i32
    %329 = arith.addi %327, %c0_i32_132 : i32
    %330 = arith.index_cast %329 : i32 to index
    %331 = memref.load %arg1[%330] : memref<128xi32, #tpu.memory_space<smem>>
    %332 = arith.index_cast %331 : i32 to index
    %c0_133 = arith.constant 0 : index
    %333 = vector.load %arg2[%332, %c0_133] : memref<128x128xf32, #tpu.memory_space<vmem>>, vector<1x128xf32>
    %334 = arith.addf %328, %333 : vector<1x128xf32>
    %c1_i32_134 = arith.constant 1 : i32
    %335 = arith.addi %327, %c1_i32_134 : i32
    %336 = arith.index_cast %335 : i32 to index
    %337 = memref.load %arg1[%336] : memref<128xi32, #tpu.memory_space<smem>>
    %338 = arith.index_cast %337 : i32 to index
    %c0_135 = arith.constant 0 : index
    %339 = vector.load %arg2[%338, %c0_135] : memref<128x128xf32, #tpu.memory_space<vmem>>, vector<1x128xf32>
    %340 = arith.addf %334, %339 : vector<1x128xf32>
    %c2_i32_136 = arith.constant 2 : i32
    %341 = arith.addi %327, %c2_i32_136 : i32
    %342 = arith.index_cast %341 : i32 to index
    %343 = memref.load %arg1[%342] : memref<128xi32, #tpu.memory_space<smem>>
    %344 = arith.index_cast %343 : i32 to index
    %c0_137 = arith.constant 0 : index
    %345 = vector.load %arg2[%344, %c0_137] : memref<128x128xf32, #tpu.memory_space<vmem>>, vector<1x128xf32>
    %346 = arith.addf %340, %345 : vector<1x128xf32>
    %c3_i32_138 = arith.constant 3 : i32
    %347 = arith.addi %327, %c3_i32_138 : i32
    %348 = arith.index_cast %347 : i32 to index
    %349 = memref.load %arg1[%348] : memref<128xi32, #tpu.memory_space<smem>>
    %350 = arith.index_cast %349 : i32 to index
    %c0_139 = arith.constant 0 : index
    %351 = vector.load %arg2[%350, %c0_139] : memref<128x128xf32, #tpu.memory_space<vmem>>, vector<1x128xf32>
    %352 = arith.addf %346, %351 : vector<1x128xf32>
    %c4_i32_140 = arith.constant 4 : i32
    %353 = arith.addi %327, %c4_i32_140 : i32
    %354 = arith.index_cast %353 : i32 to index
    %355 = memref.load %arg1[%354] : memref<128xi32, #tpu.memory_space<smem>>
    %356 = arith.index_cast %355 : i32 to index
    %c0_141 = arith.constant 0 : index
    %357 = vector.load %arg2[%356, %c0_141] : memref<128x128xf32, #tpu.memory_space<vmem>>, vector<1x128xf32>
    %358 = arith.addf %352, %357 : vector<1x128xf32>
    %c5_i32_142 = arith.constant 5 : i32
    %359 = arith.addi %327, %c5_i32_142 : i32
    %360 = arith.index_cast %359 : i32 to index
    %361 = memref.load %arg1[%360] : memref<128xi32, #tpu.memory_space<smem>>
    %362 = arith.index_cast %361 : i32 to index
    %c0_143 = arith.constant 0 : index
    %363 = vector.load %arg2[%362, %c0_143] : memref<128x128xf32, #tpu.memory_space<vmem>>, vector<1x128xf32>
    %364 = arith.addf %358, %363 : vector<1x128xf32>
    %c6_i32_144 = arith.constant 6 : i32
    %365 = arith.addi %327, %c6_i32_144 : i32
    %366 = arith.index_cast %365 : i32 to index
    %367 = memref.load %arg1[%366] : memref<128xi32, #tpu.memory_space<smem>>
    %368 = arith.index_cast %367 : i32 to index
    %c0_145 = arith.constant 0 : index
    %369 = vector.load %arg2[%368, %c0_145] : memref<128x128xf32, #tpu.memory_space<vmem>>, vector<1x128xf32>
    %370 = arith.addf %364, %369 : vector<1x128xf32>
    %c7_i32_146 = arith.constant 7 : i32
    %371 = arith.addi %327, %c7_i32_146 : i32
    %372 = arith.index_cast %371 : i32 to index
    %373 = memref.load %arg1[%372] : memref<128xi32, #tpu.memory_space<smem>>
    %374 = arith.index_cast %373 : i32 to index
    %c0_147 = arith.constant 0 : index
    %375 = vector.load %arg2[%374, %c0_147] : memref<128x128xf32, #tpu.memory_space<vmem>>, vector<1x128xf32>
    %376 = arith.addf %370, %375 : vector<1x128xf32>
    %c8_i32_148 = arith.constant 8 : i32
    %c6 = arith.constant 6 : index
    %c0_149 = arith.constant 0 : index
    %377 = vector.load %arg4[%c6, %c0_149] : memref<8x128xf32, #tpu.memory_space<vmem>>, vector<1x128xf32>
    tpu.vector_store %arg4[%c6, %c0_149], %376 {strides = array<i32>} : memref<8x128xf32, #tpu.memory_space<vmem>>, vector<1x128xf32>,
    %c8_i32_150 = arith.constant 8 : i32
    %378 = arith.muli %arg0, %c8_i32_150 : i32
    %c7_i32_151 = arith.constant 7 : i32
    %379 = arith.addi %378, %c7_i32_151 : i32
    %c15_i32_152 = arith.constant 15 : i32
    %380 = arith.minsi %379, %c15_i32_152 : i32
    %c8_i32_153 = arith.constant 8 : i32
    %381 = arith.muli %380, %c8_i32_153 : i32
    %cst_154 = arith.constant 0.000000e+00 : f32
    %382 = vector.broadcast %cst_154 : f32 to vector<1x128xf32>
    %c0_i32_155 = arith.constant 0 : i32
    %383 = arith.addi %381, %c0_i32_155 : i32
    %384 = arith.index_cast %383 : i32 to index
    %385 = memref.load %arg1[%384] : memref<128xi32, #tpu.memory_space<smem>>
    %386 = arith.index_cast %385 : i32 to index
    %c0_156 = arith.constant 0 : index
    %387 = vector.load %arg2[%386, %c0_156] : memref<128x128xf32, #tpu.memory_space<vmem>>, vector<1x128xf32>
    %388 = arith.addf %382, %387 : vector<1x128xf32>
    %c1_i32_157 = arith.constant 1 : i32
    %389 = arith.addi %381, %c1_i32_157 : i32
    %390 = arith.index_cast %389 : i32 to index
    %391 = memref.load %arg1[%390] : memref<128xi32, #tpu.memory_space<smem>>
    %392 = arith.index_cast %391 : i32 to index
    %c0_158 = arith.constant 0 : index
    %393 = vector.load %arg2[%392, %c0_158] : memref<128x128xf32, #tpu.memory_space<vmem>>, vector<1x128xf32>
    %394 = arith.addf %388, %393 : vector<1x128xf32>
    %c2_i32_159 = arith.constant 2 : i32
    %395 = arith.addi %381, %c2_i32_159 : i32
    %396 = arith.index_cast %395 : i32 to index
    %397 = memref.load %arg1[%396] : memref<128xi32, #tpu.memory_space<smem>>
    %398 = arith.index_cast %397 : i32 to index
    %c0_160 = arith.constant 0 : index
    %399 = vector.load %arg2[%398, %c0_160] : memref<128x128xf32, #tpu.memory_space<vmem>>, vector<1x128xf32>
    %400 = arith.addf %394, %399 : vector<1x128xf32>
    %c3_i32_161 = arith.constant 3 : i32
    %401 = arith.addi %381, %c3_i32_161 : i32
    %402 = arith.index_cast %401 : i32 to index
    %403 = memref.load %arg1[%402] : memref<128xi32, #tpu.memory_space<smem>>
    %404 = arith.index_cast %403 : i32 to index
    %c0_162 = arith.constant 0 : index
    %405 = vector.load %arg2[%404, %c0_162] : memref<128x128xf32, #tpu.memory_space<vmem>>, vector<1x128xf32>
    %406 = arith.addf %400, %405 : vector<1x128xf32>
    %c4_i32_163 = arith.constant 4 : i32
    %407 = arith.addi %381, %c4_i32_163 : i32
    %408 = arith.index_cast %407 : i32 to index
    %409 = memref.load %arg1[%408] : memref<128xi32, #tpu.memory_space<smem>>
    %410 = arith.index_cast %409 : i32 to index
    %c0_164 = arith.constant 0 : index
    %411 = vector.load %arg2[%410, %c0_164] : memref<128x128xf32, #tpu.memory_space<vmem>>, vector<1x128xf32>
    %412 = arith.addf %406, %411 : vector<1x128xf32>
    %c5_i32_165 = arith.constant 5 : i32
    %413 = arith.addi %381, %c5_i32_165 : i32
    %414 = arith.index_cast %413 : i32 to index
    %415 = memref.load %arg1[%414] : memref<128xi32, #tpu.memory_space<smem>>
    %416 = arith.index_cast %415 : i32 to index
    %c0_166 = arith.constant 0 : index
    %417 = vector.load %arg2[%416, %c0_166] : memref<128x128xf32, #tpu.memory_space<vmem>>, vector<1x128xf32>
    %418 = arith.addf %412, %417 : vector<1x128xf32>
    %c6_i32_167 = arith.constant 6 : i32
    %419 = arith.addi %381, %c6_i32_167 : i32
    %420 = arith.index_cast %419 : i32 to index
    %421 = memref.load %arg1[%420] : memref<128xi32, #tpu.memory_space<smem>>
    %422 = arith.index_cast %421 : i32 to index
    %c0_168 = arith.constant 0 : index
    %423 = vector.load %arg2[%422, %c0_168] : memref<128x128xf32, #tpu.memory_space<vmem>>, vector<1x128xf32>
    %424 = arith.addf %418, %423 : vector<1x128xf32>
    %c7_i32_169 = arith.constant 7 : i32
    %425 = arith.addi %381, %c7_i32_169 : i32
    %426 = arith.index_cast %425 : i32 to index
    %427 = memref.load %arg1[%426] : memref<128xi32, #tpu.memory_space<smem>>
    %428 = arith.index_cast %427 : i32 to index
    %c0_170 = arith.constant 0 : index
    %429 = vector.load %arg2[%428, %c0_170] : memref<128x128xf32, #tpu.memory_space<vmem>>, vector<1x128xf32>
    %430 = arith.addf %424, %429 : vector<1x128xf32>
    %c8_i32_171 = arith.constant 8 : i32
    %c7 = arith.constant 7 : index
    %c0_172 = arith.constant 0 : index
    %431 = vector.load %arg4[%c7, %c0_172] : memref<8x128xf32, #tpu.memory_space<vmem>>, vector<1x128xf32>
    tpu.vector_store %arg4[%c7, %c0_172], %430 {strides = array<i32>} : memref<8x128xf32, #tpu.memory_space<vmem>>, vector<1x128xf32>,
    %c0_173 = arith.constant 0 : index
    %c0_174 = arith.constant 0 : index
    %432 = vector.load %arg4[%c0_173, %c0_174] : memref<8x128xf32, #tpu.memory_space<vmem>>, vector<8x128xf32>
    %cst_175 = arith.constant 1.250000e-01 : f32
    %433 = vector.broadcast %cst_175 : f32 to vector<8x128xf32>
    %434 = arith.mulf %432, %433 : vector<8x128xf32>
    %c0_176 = arith.constant 0 : index
    %c0_177 = arith.constant 0 : index
    %435 = vector.load %arg3[%c0_176, %c0_177] : memref<8x128xf32, #tpu.memory_space<vmem>>, vector<8x128xf32>
    tpu.vector_store %arg3[%c0_176, %c0_177], %434 {strides = array<i32>} : memref<8x128xf32, #tpu.memory_space<vmem>>, vector<8x128xf32>,
    return
  }
  func.func @transform_0(%arg0: i32, %arg1: memref<128xi32, #tpu.memory_space<smem>>) -> (i32, i32) {
    %c0_i32 = arith.constant 0 : i32
    %c0_i32_0 = arith.constant 0 : i32
    %c0_i32_1 = arith.constant 0 : i32
    return %c0_i32, %c0_i32_0 : i32, i32
  }
  func.func @transform_1(%arg0: i32, %arg1: memref<128xi32, #tpu.memory_space<smem>>) -> (i32, i32) {
    %c0_i32 = arith.constant 0 : i32
    %c0_i32_0 = arith.constant 0 : i32
    return %arg0, %c0_i32 : i32, i32
  }
}

</mosaic_0001>

<bundles_post_ra>
// kernel: tpu_custom_call.1
= control target key start
LH: loop header
LB: loop body
LE: loop exit
PB: predicated region body
PF: predicated region fallthrough
CT: control target
= control target key end

     0   :  { %s781_s9 = smov [#allocation4]   ;;  %s1001_s0 = inlined_call_operand.hbm [shape: s32[128], index: 0, kind: input, shape index: {}]   ;;  %s1002_s1 = inlined_call_operand.hbm [shape: f32[128,128], index: 1, kind: input, shape index: {}]   ;;  %s1003_s2 = inlined_call_operand.hbm [shape: f32[16,128], index: 2, kind: output, shape index: {}]  }
   0x1   :  { %1006 = sst [smem:[#allocation12_spill]] %s1002_s1 }
   0x2   :  { %8 = dma.hbm_to_smem %s1001_s0, 16, %s781_s9, [#allocation3] }
   0x3   :  { %755 = dma.done.wait [#allocation3], 16 }
   0x4   :  { %756 = vsyncadd [#allocation3], 4294967280 }
   0x5   :  { %10 = sfence }
   0x6   :  { %11 = vsyncpa [#allocation6], 0 }
   0x7   :  { %12 = vsyncpa [#allocation7], 0 }
   0x8   :  { %14 = vsyncpa [#allocation7 + $0x1], 0  ;;  %s804_s12 = smov 0   ;;  %s806_s13 = smov 0  }
   0x9   :  { %s808_s14 = smov 0   ;;  %s810_s15 = smov 0  }
   0xa LB: > { %s825_s0 = sadd.s32 4294967295, %s779_s15   ;;  %s607_s16 = sadd.s32 4294967294, %s779_s15   ;;  %s779_s15 = sphi %s810_s15, %s1019_s15   ;;  %s775_s14 = sphi %s808_s14, %s1018_s14   ;;  %s771_s13 = sphi %s806_s13, %s1017_s13   ;;  %s767_s12 = sphi %s804_s12, %s1016_s12  }
   0xb   : > { %s829_s17 = sadd.s32 1, %s779_s15   ;;  %s48_s18 = sadd.s32 1, %s775_s14 }
   0xc   : > { %s45_s19 = ssub.s32 %s779_s15, %s829_s17  ;;  %p58_p0 = scmp.ne.s32.totalorder %s775_s14, %s771_s13 }
   0xd   : > { %p46_p1 = scmp.eq.s32.totalorder %s45_s19, 0  ;;  %p59_p2 = scmp.eq.s32.totalorder %s825_s0, 1 }
   0xe   : > { %p64_p3 = scmp.ne.s32.totalorder %s771_s13, %s767_s12  ;;  %p65_p4 = scmp.eq.s32.totalorder %s607_s16, 1 }
   0xf   : > { %s840_s20 = scalar_select %p46_p1, %s775_s14, %s48_s18  }
  0x10   : > { %p842_p5 = por %p59_p2, %p58_p0  ;;  %p846_p6 = por %p65_p4, %p64_p3 }
  0x11   : > { %p608_p7 = scmp.ge.s32.totalorder %s779_s15, 1  ;;  %p72_p8 = scmp.lt.s32.totalorder %s779_s15, 3 }
  0x12   : > { %s1008_s22 = scalar_select %p846_p6, 1, 0 }
  0x13   : > { %p640_p9 = scmp.eq.s32.totalorder %s825_s0, 0  ;;  %p853_p10 = pnand %p608_p7, %p72_p8 }
  0x14   : > { %s782_s24 = smov [#allocation5]  }
  0x15   : > { %s84_s25 = sshll.u32 %s782_s24, 4  ;;  %p632_p11 = pneg %p853_p10  ;;  %s85_s25 = int_to_ptr.vmem [resolvable:$true] %s84_s25 }
  0x16   : > { %s698_s26 = scalar_lea.vmem %s85_s25, 2048  ;;  %p706_p3 = scmp.lt.s32.totalorder %s85_s25, %s85_s25 }
  0x17   : > { %p633_p12 = pnand %p640_p9, %p632_p11  ;;  %p699_p0 = scmp.ne.s32.totalorder %s85_s25, %s698_s26 }
  0x18   : > { %p707_p4 = scmp.lt.s32.totalorder %s698_s26, %s698_s26 }
  0x19   : > { %p689_p13 = pneg %p633_p12 }
  0x1a   : > { %p708_p6 = por %p707_p4, %p706_p3 }
  0x1b   : > { %p701_p1 = pnand %p699_p0, %p689_p13 }
  0x1d   : > { %p702_p2 = pneg %p701_p1 }
  0x1f   : > { %p709_p7 = pnand %p708_p6, %p702_p2 }
  0x21   : > { %712 = shalt.err (!%p709_p7)
}
  0x22   : > { %s783_s27 = smov 128   ;;  %s784_s28 = smov 8  }
  0x23   : > { %s1010_s1 = sld [smem:[#allocation12_spill]] }
  0x25   : > { %100 = sbr.rel (%p853_p10) target bundleno = 188 (0xbc), region = 24 }
  0x29   : > { %635 = dma.hbm_to_vmem [thread:$0]  (!%p633_p12), %s1010_s1, 2048, %s85_s25, [#allocation6], %s783_s27, %s783_s27, %s784_s28  }
  0x2a   : > { %758 = dma.done.wait (%p640_p9), [#allocation6], 2048  }
  0x2b   : > { %760 = vsyncadd (%p640_p9), [#allocation6], 4294965248  ;;  %s871_s3 = sshll.u32 %s825_s0, 3 }
  0x2c   : > { %p116_p6 = scmp.lt.s32.totalorder %s871_s3, 15  ;;  %s159_s4 = sadd.s32 1, %s871_s3 }
  0x2d   : > { %p160_p8 = scmp.lt.s32.totalorder %s159_s4, 15  ;;  %s1004_s5 = sadd.s32 2, %s871_s3 }
  0x2e   : > { %s117_s6 = scalar_select %p116_p6, %s871_s3, 15 }
  0x2f   : > { %s1021_s4 = smov (!%p160_p8, %s159_s4), 15  ;;  %p879_p10 = scmp.lt.s32.totalorder %s1004_s5, 15 }
  0x30   : > { %s614_s7 = sshll.u32 %s117_s6, 3 }
  0x31   : > { %s119_s9 = sld [smem:[#allocation4 + %s614_s7]]  ;;  %s123_s10 = sadd.s32 1, %s614_s7 }
  0x32   : > { %s124_s11 = sld [smem:[#allocation4 + %s123_s10]]  ;;  %s128_s16 = sadd.s32 2, %s614_s7 }
  0x33   : > { %s129_s18 = sld [smem:[#allocation4 + %s128_s16]]  ;;  %s133_s19 = sadd.s32 3, %s614_s7 }
  0x34   : > { %s134_s23 = sld [smem:[#allocation4 + %s133_s19]]  ;;  %s138_s24 = sadd.s32 4, %s614_s7 }
  0x35   : > { %s139_s25 = sld [smem:[#allocation4 + %s138_s24]]  ;;  %s143_s26 = sadd.s32 5, %s614_s7 }
  0x36   : > { %s144_s27 = sld [smem:[#allocation4 + %s143_s26]]  ;;  %s148_s28 = sadd.s32 6, %s614_s7 }
  0x37   : > { %s883_s29 = sld [smem:[#allocation4 + %s148_s28]]  ;;  %s120_s30 = scalar_lea.vmem [#allocation5], %s119_s9 }
  0x38   : > { %v121_v0 = vld [vmem:[%s120_s30] sm:$0x1]  ;;  %s153_s6 = sadd.s32 7, %s614_s7  ;;  %s125_s5 = scalar_lea.vmem [#allocation5], %s124_s11 }
  0x39   : > { %v126_v1 = vld [vmem:[%s125_s5] sm:$0x1]  ;;  %s885_s1 = sld [smem:[#allocation4 + %s153_s6]]  ;;  %s130_s10 = scalar_lea.vmem [#allocation5], %s129_s18 }
  0x3a   : > { %v127_v2 = vadd.f32 %v126_v1, %v121_v0  ;;  %v131_v3 = vld [vmem:[%s130_s10] sm:$0x1]  ;;  %s887_s16 = sshll.u32 %s1021_s4, 3  ;;  %s135_s19 = scalar_lea.vmem [#allocation5], %s134_s23 }
  0x3b   : > { %v136_v4 = vld [vmem:[%s135_s19] sm:$0x1]  ;;  %s163_s9 = sld [smem:[#allocation4 + %s887_s16]]  ;;  %s167_s7 = sadd.s32 1, %s887_s16 }
  0x3c   : > { %v132_v5 = vadd.f32 %v131_v3, %v127_v2  ;;  %s140_s11 = scalar_lea.vmem [#allocation5], %s139_s25  ;;  %s168_s5 = sld [smem:[#allocation4 + %s167_s7]] }
  0x3d   : > { %v141_v6 = vld [vmem:[%s140_s11] sm:$0x1]  ;;  %s172_s18 = sadd.s32 2, %s887_s16  ;;  %s177_s4 = sadd.s32 3, %s887_s16 }
  0x3e   : > { %v137_v7 = vadd.f32 %v136_v4, %v132_v5  ;;  %s145_s24 = scalar_lea.vmem [#allocation5], %s144_s27  ;;  %s173_s26 = sld [smem:[#allocation4 + %s172_s18]] }
  0x3f   : > { %v146_v8 = vld [vmem:[%s145_s24] sm:$0x1]  ;;  %s178_s23 = sld [smem:[#allocation4 + %s177_s4]]  ;;  %s182_s28 = sadd.s32 4, %s887_s16 }
  0x40   : > { %v142_v9 = vadd.f32 %v141_v6, %v137_v7  ;;  %s150_s30 = scalar_lea.vmem [#allocation5], %s883_s29  ;;  %s183_s6 = sld [smem:[#allocation4 + %s182_s28]] }
  0x41   : > { %v151_v10 = vld [vmem:[%s150_s30] sm:$0x1]  ;;  %s164_s25 = scalar_lea.vmem [#allocation5], %s163_s9  ;;  %s187_s10 = sadd.s32 5, %s887_s16 }
  0x42   : > { %v147_v11 = vadd.f32 %v146_v8, %v142_v9  ;;  %v165_v12 = vld [vmem:[%s164_s25] sm:$0x1]  ;;  %s192_s19 = sadd.s32 6, %s887_s16  ;;  %s155_s7 = scalar_lea.vmem [#allocation5], %s885_s1 }
  0x43   : > { %v156_v13 = vld [vmem:[%s155_s7] sm:$0x1]  ;;  %s188_s11 = sld [smem:[#allocation4 + %s187_s10]]  ;;  %s169_s27 = scalar_lea.vmem [#allocation5], %s168_s5 }
  0x44   : > { %v152_v14 = vadd.f32 %v151_v10, %v147_v11  ;;  %v170_v15 = vld [vmem:[%s169_s27] sm:$0x1]  ;;  %s193_s18 = sld [smem:[#allocation4 + %s192_s19]]  ;;  %s197_s4 = sadd.s32 7, %s887_s16 }
  0x45   : > { %v171_v16 = vadd.f32 %v170_v15, %v165_v12  ;;  %s198_s29 = sld [smem:[#allocation4 + %s197_s4]]  ;;  %s174_s24 = scalar_lea.vmem [#allocation5], %s173_s26 }
  0x46   : > { %v157_v17 = vadd.f32 %v156_v13, %v152_v14  ;;  %v175_v18 = vld [vmem:[%s174_s24] sm:$0x1]  ;;  %s179_s9 = scalar_lea.vmem [#allocation5], %s178_s23  ;;  %s184_s1 = scalar_lea.vmem [#allocation5], %s183_s6 }
  0x47   : > { %v176_v19 = vadd.f32 %v175_v18, %v171_v16  ;;  %v180_v20 = vld [vmem:[%s179_s9] sm:$0x1]  ;;  %s1012_s28 = sadd.s32 2, %s871_s3  ;;  %s247_s5 = sadd.s32 3, %s871_s3 }
  0x48   : > { %158 = vst [vmem:[#allocation2] sm:$0x1] %v157_v17  ;;  %v185_v21 = vld [vmem:[%s184_s1] sm:$0x1]  ;;  %s1023_s28 = smov (!%p879_p10, %s1012_s28), 15  ;;  %p248_p9 = scmp.lt.s32.totalorder %s247_s5, 15 }
  0x49   : > { %v181_v22 = vadd.f32 %v180_v20, %v176_v19  ;;  %s189_s30 = scalar_lea.vmem [#allocation5], %s188_s11  ;;  %s616_s25 = sshll.u32 %s1023_s28, 3 }
  0x4a   : > { %v190_v23 = vld [vmem:[%s189_s30] sm:$0x1]  ;;  %s207_s16 = sld [smem:[#allocation4 + %s616_s25]]  ;;  %s194_s10 = scalar_lea.vmem [#allocation5], %s193_s18 }
  0x4b   : > { %v186_v24 = vadd.f32 %v185_v21, %v181_v22  ;;  %v195_v25 = vld [vmem:[%s194_s10] sm:$0x1]  ;;  %s211_s26 = sadd.s32 1, %s616_s25  ;;  %s216_s19 = sadd.s32 2, %s616_s25 }
  0x4c   : > { %s212_s23 = sld [smem:[#allocation4 + %s211_s26]]  ;;  %s221_s7 = sadd.s32 3, %s616_s25 }
  0x4d   : > { %v191_v26 = vadd.f32 %v190_v23, %v186_v24  ;;  %s199_s27 = scalar_lea.vmem [#allocation5], %s198_s29  ;;  %s217_s6 = sld [smem:[#allocation4 + %s216_s19]] }
  0x4e   : > { %v200_v27 = vld [vmem:[%s199_s27] sm:$0x1]  ;;  %s226_s4 = sadd.s32 4, %s616_s25  ;;  %s222_s8 = sld [smem:[#allocation4 + %s221_s7]] }
  0x4f   : > { %v196_v28 = vadd.f32 %v195_v25, %v191_v26  ;;  %s231_s24 = sadd.s32 5, %s616_s25  ;;  %s227_s11 = sld [smem:[#allocation4 + %s226_s4]] }
  0x50   : > { %s236_s9 = sadd.s32 6, %s616_s25  ;;  %s232_s1 = sld [smem:[#allocation4 + %s231_s24]] }
  0x51   : > { %v201_v29 = vadd.f32 %v200_v27, %v196_v28  ;;  %s208_s18 = scalar_lea.vmem [#allocation5], %s207_s16  ;;  %s237_s28 = sld [smem:[#allocation4 + %s236_s9]] }
  0x52   : > { %v209_v30 = vld [vmem:[%s208_s18] sm:$0x1]  ;;  %s241_s30 = sadd.s32 7, %s616_s25  ;;  %s213_s29 = scalar_lea.vmem [#allocation5], %s212_s23 }
  0x53   : > { %202 = vst [vmem:[#allocation2 + $0x1] sm:$0x1] %v201_v29  ;;  %s904_s10 = sld [smem:[#allocation4 + %s241_s30]]  ;;  %v214_v31 = vld [vmem:[%s213_s29] sm:$0x1]  ;;  %s291_s26 = sadd.s32 4, %s871_s3 }
  0x54   : > { %v215_v32 = vadd.f32 %v214_v31, %v209_v30  ;;  %s218_s19 = scalar_lea.vmem [#allocation5], %s217_s6  ;;  %s223_s7 = scalar_lea.vmem [#allocation5], %s222_s8 }
  0x55   : > { %v219_v33 = vld [vmem:[%s218_s19] sm:$0x1]  ;;  %p292_p11 = scmp.lt.s32.totalorder %s291_s26, 15  ;;  %s228_s16 = scalar_lea.vmem [#allocation5], %s227_s11 }
  0x56   : > { %v224_v34 = vld [vmem:[%s223_s7] sm:$0x1]  ;;  %v220_v35 = vadd.f32 %v219_v33, %v215_v32  ;;  %s1005_s25 = sadd.s32 5, %s871_s3  ;;  %s233_s27 = scalar_lea.vmem [#allocation5], %s232_s1 }
  0x57   : > { %v229_v36 = vld [vmem:[%s228_s16] sm:$0x1]  ;;  %s1025_s5 = smov (!%p248_p9, %s247_s5), 15  ;;  %s1027_s26 = smov (!%p292_p11, %s291_s26), 15 }
  0x58   : > { %v225_v37 = vadd.f32 %v224_v34, %v220_v35  ;;  %v234_v38 = vld [vmem:[%s233_s27] sm:$0x1]  ;;  %s238_s23 = scalar_lea.vmem [#allocation5], %s237_s28  ;;  %s617_s6 = sshll.u32 %s1025_s5, 3 }
  0x59   : > { %v239_v40 = vld [vmem:[%s238_s23] sm:$0x1]  ;;  %p916_p12 = scmp.lt.s32.totalorder %s1005_s25, 15  ;;  %s251_s8 = sld [smem:[#allocation4 + %s617_s6]] }
  0x5a   : > { %v230_v39 = vadd.f32 %v229_v36, %v225_v37  ;;  %s255_s24 = sadd.s32 1, %s617_s6  ;;  %s243_s11 = scalar_lea.vmem [#allocation5], %s904_s10 }
  0x5b   : > { %v244_v42 = vld [vmem:[%s243_s11] sm:$0x1]  ;;  %s256_s9 = sld [smem:[#allocation4 + %s255_s24]]  ;;  %s260_s1 = sadd.s32 2, %s617_s6 }
  0x5c   : > { %v235_v41 = vadd.f32 %v234_v38, %v230_v39  ;;  %s261_s18 = sld [smem:[#allocation4 + %s260_s1]]  ;;  %s265_s30 = sadd.s32 3, %s617_s6 }
  0x5d   : > { %s266_s29 = sld [smem:[#allocation4 + %s265_s30]]  ;;  %s270_s19 = sadd.s32 4, %s617_s6 }
  0x5e   : > { %v240_v43 = vadd.f32 %v239_v40, %v235_v41  ;;  %s271_s5 = sld [smem:[#allocation4 + %s270_s19]]  ;;  %s275_s28 = sadd.s32 5, %s617_s6 }
  0x5f   : > { %s276_s7 = sld [smem:[#allocation4 + %s275_s28]]  ;;  %s280_s16 = sadd.s32 6, %s617_s6 }
  0x60   : > { %v245_v44 = vadd.f32 %v244_v42, %v240_v43  ;;  %s921_s27 = sld [smem:[#allocation4 + %s280_s16]]  ;;  %s252_s23 = scalar_lea.vmem [#allocation5], %s251_s8 }
  0x61   : > { %v253_v45 = vld [vmem:[%s252_s23] sm:$0x1]  ;;  %s285_s10 = sadd.s32 7, %s617_s6  ;;  %s257_s11 = scalar_lea.vmem [#allocation5], %s256_s9 }
  0x62   : > { %246 = vst [vmem:[#allocation2 + $0x2] sm:$0x1] %v245_v44  ;;  %v258_v46 = vld [vmem:[%s257_s11] sm:$0x1]  ;;  %s923_s24 = sld [smem:[#allocation4 + %s285_s10]]  ;;  %s262_s1 = scalar_lea.vmem [#allocation5], %s261_s18 }
  0x63   : > { %v259_v47 = vadd.f32 %v258_v46, %v253_v45  ;;  %v263_v48 = vld [vmem:[%s262_s1] sm:$0x1]  ;;  %s926_s30 = sshll.u32 %s1027_s26, 3  ;;  %s267_s19 = scalar_lea.vmem [#allocation5], %s266_s29 }
  0x64   : > { %v268_v49 = vld [vmem:[%s267_s19] sm:$0x1]  ;;  %s295_s8 = sld [smem:[#allocation4 + %s926_s30]]  ;;  %s299_s6 = sadd.s32 1, %s926_s30 }
  0x65   : > { %v264_v50 = vadd.f32 %v263_v48, %v259_v47  ;;  %s272_s9 = scalar_lea.vmem [#allocation5], %s271_s5  ;;  %s300_s28 = sld [smem:[#allocation4 + %s299_s6]] }
  0x66   : > { %v273_v51 = vld [vmem:[%s272_s9] sm:$0x1]  ;;  %s304_s18 = sadd.s32 2, %s926_s30  ;;  %s309_s26 = sadd.s32 3, %s926_s30 }
  0x67   : > { %v269_v52 = vadd.f32 %v268_v49, %v264_v50  ;;  %s277_s16 = scalar_lea.vmem [#allocation5], %s276_s7  ;;  %s305_s23 = sld [smem:[#allocation4 + %s304_s18]] }
  0x68   : > { %v278_v53 = vld [vmem:[%s277_s16] sm:$0x1]  ;;  %s310_s29 = sld [smem:[#allocation4 + %s309_s26]]  ;;  %s314_s10 = sadd.s32 4, %s926_s30 }
  0x69   : > { %v274_v54 = vadd.f32 %v273_v51, %v269_v52  ;;  %s282_s11 = scalar_lea.vmem [#allocation5], %s921_s27  ;;  %s315_s1 = sld [smem:[#allocation4 + %s314_s10]] }
  0x6a   : > { %v283_v55 = vld [vmem:[%s282_s11] sm:$0x1]  ;;  %s296_s5 = scalar_lea.vmem [#allocation5], %s295_s8  ;;  %s319_s19 = sadd.s32 5, %s926_s30 }
  0x6b   : > { %v279_v56 = vadd.f32 %v278_v53, %v274_v54  ;;  %v297_v57 = vld [vmem:[%s296_s5] sm:$0x1]  ;;  %s324_s6 = sadd.s32 6, %s926_s30  ;;  %s287_s9 = scalar_lea.vmem [#allocation5], %s923_s24 }
  0x6c   : > { %v288_v58 = vld [vmem:[%s287_s9] sm:$0x1]  ;;  %s320_s25 = sld [smem:[#allocation4 + %s319_s19]]  ;;  %s301_s7 = scalar_lea.vmem [#allocation5], %s300_s28 }
  0x6d   : > { %v284_v59 = vadd.f32 %v283_v55, %v279_v56  ;;  %v302_v60 = vld [vmem:[%s301_s7] sm:$0x1]  ;;  %s325_s18 = sld [smem:[#allocation4 + %s324_s6]]  ;;  %s329_s26 = sadd.s32 7, %s926_s30 }
  0x6e   : > { %v303_v61 = vadd.f32 %v302_v60, %v297_v57  ;;  %s330_s27 = sld [smem:[#allocation4 + %s329_s26]]  ;;  %s306_s16 = scalar_lea.vmem [#allocation5], %s305_s23 }
  0x6f   : > { %v289_v62 = vadd.f32 %v288_v58, %v284_v59  ;;  %v307_v63 = vld [vmem:[%s306_s16] sm:$0x1]  ;;  %s311_s8 = scalar_lea.vmem [#allocation5], %s310_s29  ;;  %s316_s24 = scalar_lea.vmem [#allocation5], %s315_s1 }
  0x70   : > { %v308_v0 = vadd.f32 %v307_v63, %v303_v61  ;;  %v312_v1 = vld [vmem:[%s311_s8] sm:$0x1]  ;;  %s1014_s10 = sadd.s32 5, %s871_s3  ;;  %s379_s28 = sadd.s32 6, %s871_s3 }
  0x71   : > { %290 = vst [vmem:[#allocation2 + $0x3] sm:$0x1] %v289_v62  ;;  %v317_v2 = vld [vmem:[%s316_s24] sm:$0x1]  ;;  %s1029_s10 = smov (!%p916_p12, %s1014_s10), 15  ;;  %p380_p13 = scmp.lt.s32.totalorder %s379_s28, 15 }
  0x72   : > { %v313_v3 = vadd.f32 %v312_v1, %v308_v0  ;;  %s321_s11 = scalar_lea.vmem [#allocation5], %s320_s25  ;;  %s619_s5 = sshll.u32 %s1029_s10, 3 }
  0x73   : > { %v322_v4 = vld [vmem:[%s321_s11] sm:$0x1]  ;;  %s339_s30 = sld [smem:[#allocation4 + %s619_s5]]  ;;  %s326_s19 = scalar_lea.vmem [#allocation5], %s325_s18 }
  0x74   : > { %v318_v5 = vadd.f32 %v317_v2, %v313_v3  ;;  %v327_v6 = vld [vmem:[%s326_s19] sm:$0x1]  ;;  %s343_s23 = sadd.s32 1, %s619_s5  ;;  %s348_s6 = sadd.s32 2, %s619_s5 }
  0x75   : > { %s344_s29 = sld [smem:[#allocation4 + %s343_s23]]  ;;  %s353_s9 = sadd.s32 3, %s619_s5 }
  0x76   : > { %v323_v7 = vadd.f32 %v322_v4, %v318_v5  ;;  %s331_s7 = scalar_lea.vmem [#allocation5], %s330_s27  ;;  %s349_s1 = sld [smem:[#allocation4 + %s348_s6]] }
  0x77   : > { %v332_v8 = vld [vmem:[%s331_s7] sm:$0x1]  ;;  %s358_s26 = sadd.s32 4, %s619_s5  ;;  %s354_s4 = sld [smem:[#allocation4 + %s353_s9]] }
  0x78   : > { %v328_v9 = vadd.f32 %v327_v6, %v323_v7  ;;  %s363_s16 = sadd.s32 5, %s619_s5  ;;  %s359_s25 = sld [smem:[#allocation4 + %s358_s26]] }
  0x79   : > { %s368_s8 = sadd.s32 6, %s619_s5  ;;  %s364_s24 = sld [smem:[#allocation4 + %s363_s16]] }
  0x7a   : > { %v333_v10 = vadd.f32 %v332_v8, %v328_v9  ;;  %s340_s18 = scalar_lea.vmem [#allocation5], %s339_s30  ;;  %s369_s10 = sld [smem:[#allocation4 + %s368_s8]] }
  0x7b   : > { %v341_v11 = vld [vmem:[%s340_s18] sm:$0x1]  ;;  %s373_s11 = sadd.s32 7, %s619_s5  ;;  %s345_s23 = scalar_lea.vmem [#allocation5], %s344_s29 }
  0x7c   : > { %334 = vst [vmem:[#allocation2 + $0x4] sm:$0x1] %v333_v10  ;;  %s374_s19 = sld [smem:[#allocation4 + %s373_s11]]  ;;  %v346_v12 = vld [vmem:[%s345_s23] sm:$0x1]  ;;  %s423_s27 = sadd.s32 7, %s871_s3 }
  0x7d   : > { %v347_v13 = vadd.f32 %v346_v12, %v341_v11  ;;  %s350_s6 = scalar_lea.vmem [#allocation5], %s349_s1  ;;  %s355_s9 = scalar_lea.vmem [#allocation5], %s354_s4 }
  0x7e   : > { %v351_v14 = vld [vmem:[%s350_s6] sm:$0x1]  ;;  %p424_p0 = scmp.lt.s32.totalorder %s423_s27, 15  ;;  %s360_s7 = scalar_lea.vmem [#allocation5], %s359_s25 }
  0x7f   : > { %v356_v15 = vld [vmem:[%s355_s9] sm:$0x1]  ;;  %v352_v16 = vadd.f32 %v351_v14, %v347_v13  ;;  %s365_s30 = scalar_lea.vmem [#allocation5], %s364_s24  ;;  %s1031_s28 = smov (!%p380_p13, %s379_s28), 15 }
  0x80   : > { %v361_v17 = vld [vmem:[%s360_s7] sm:$0x1]  ;;  %s1033_s27 = smov (!%p424_p0, %s423_s27), 15  ;;  %s370_s5 = scalar_lea.vmem [#allocation5], %s369_s10 }
  0x81   : > { %v357_v18 = vadd.f32 %v356_v15, %v352_v16  ;;  %v366_v19 = vld [vmem:[%s365_s30] sm:$0x1]  ;;  %s620_s29 = sshll.u32 %s1031_s28, 3 }
  0x82   : > { %v371_v21 = vld [vmem:[%s370_s5] sm:$0x1]  ;;  %s383_s1 = sld [smem:[#allocation4 + %s620_s29]]  ;;  %s387_s26 = sadd.s32 1, %s620_s29 }
  0x83   : > { %v362_v20 = vadd.f32 %v361_v17, %v357_v18  ;;  %s375_s4 = scalar_lea.vmem [#allocation5], %s374_s19  ;;  %s388_s16 = sld [smem:[#allocation4 + %s387_s26]] }
  0x84   : > { %v376_v23 = vld [vmem:[%s375_s4] sm:$0x1]  ;;  %s392_s8 = sadd.s32 2, %s620_s29  ;;  %s397_s18 = sadd.s32 3, %s620_s29 }
  0x85   : > { %v367_v22 = vadd.f32 %v366_v19, %v362_v20  ;;  %s393_s25 = sld [smem:[#allocation4 + %s392_s8]]  ;;  %s402_s11 = sadd.s32 4, %s620_s29 }
  0x86   : > { %s398_s24 = sld [smem:[#allocation4 + %s397_s18]]  ;;  %s407_s23 = sadd.s32 5, %s620_s29 }
  0x87   : > { %v372_v24 = vadd.f32 %v371_v21, %v367_v22  ;;  %s403_s3 = sld [smem:[#allocation4 + %s402_s11]]  ;;  %s412_s10 = sadd.s32 6, %s620_s29 }
  0x88   : > { %s408_s6 = sld [smem:[#allocation4 + %s407_s23]]  ;;  %s384_s9 = scalar_lea.vmem [#allocation5], %s383_s1 }
  0x89   : > { %v377_v25 = vadd.f32 %v376_v23, %v372_v24  ;;  %s950_s28 = sld [smem:[#allocation4 + %s412_s10]]  ;;  %v385_v26 = vld [vmem:[%s384_s9] sm:$0x1]  ;;  %s417_s19 = sadd.s32 7, %s620_s29 }
  0x8a   : > { %s389_s7 = scalar_lea.vmem [#allocation5], %s388_s16  ;;  %s952_s30 = sld [smem:[#allocation4 + %s417_s19]] }
  0x8b   : > { %378 = vst [vmem:[#allocation2 + $0x5] sm:$0x1] %v377_v25  ;;  %v390_v27 = vld [vmem:[%s389_s7] sm:$0x1]  ;;  %s394_s5 = scalar_lea.vmem [#allocation5], %s393_s25  ;;  %s955_s26 = sshll.u32 %s1033_s27, 3 }
  0x8c   : > { %v391_v28 = vadd.f32 %v390_v27, %v385_v26  ;;  %v395_v29 = vld [vmem:[%s394_s5] sm:$0x1]  ;;  %s399_s4 = scalar_lea.vmem [#allocation5], %s398_s24  ;;  %s427_s1 = sld [smem:[#allocation4 + %s955_s26]] }
  0x8d   : > { %v400_v30 = vld [vmem:[%s399_s4] sm:$0x1]  ;;  %s431_s29 = sadd.s32 1, %s955_s26  ;;  %s404_s16 = scalar_lea.vmem [#allocation5], %s403_s3 }
  0x8e   : > { %v396_v31 = vadd.f32 %v395_v29, %v391_v28  ;;  %v405_v32 = vld [vmem:[%s404_s16] sm:$0x1]  ;;  %s432_s8 = sld [smem:[#allocation4 + %s431_s29]]  ;;  %s436_s25 = sadd.s32 2, %s955_s26 }
  0x8f   : > { %s441_s27 = sadd.s32 3, %s955_s26  ;;  %s409_s18 = scalar_lea.vmem [#allocation5], %s408_s6 }
  0x90   : > { %v401_v33 = vadd.f32 %v400_v30, %v396_v31  ;;  %v410_v34 = vld [vmem:[%s409_s18] sm:$0x1]  ;;  %s437_s11 = sld [smem:[#allocation4 + %s436_s25]]  ;;  %s446_s23 = sadd.s32 4, %s955_s26 }
  0x91   : > { %s442_s24 = sld [smem:[#allocation4 + %s441_s27]]  ;;  %s414_s10 = scalar_lea.vmem [#allocation5], %s950_s28 }
  0x92   : > { %v406_v35 = vadd.f32 %v405_v32, %v401_v33  ;;  %v415_v36 = vld [vmem:[%s414_s10] sm:$0x1]  ;;  %s447_s9 = sld [smem:[#allocation4 + %s446_s23]]  ;;  %s428_s3 = scalar_lea.vmem [#allocation5], %s427_s1 }
  0x93   : > { %v429_v38 = vld [vmem:[%s428_s3] sm:$0x1]  ;;  %s451_s19 = sadd.s32 5, %s955_s26  ;;  %s456_s7 = sadd.s32 6, %s955_s26 }
  0x94   : > { %v411_v37 = vadd.f32 %v410_v34, %v406_v35  ;;  %s419_s5 = scalar_lea.vmem [#allocation5], %s952_s30  ;;  %s452_s4 = sld [smem:[#allocation4 + %s451_s19]] }
  0x95   : > { %v420_v39 = vld [vmem:[%s419_s5] sm:$0x1]  ;;  %s433_s29 = scalar_lea.vmem [#allocation5], %s432_s8  ;;  %s457_s6 = sld [smem:[#allocation4 + %s456_s7]] }
  0x96   : > { %v416_v40 = vadd.f32 %v415_v36, %v411_v37  ;;  %v434_v41 = vld [vmem:[%s433_s29] sm:$0x1]  ;;  %s461_s16 = sadd.s32 7, %s955_s26  ;;  %s438_s27 = scalar_lea.vmem [#allocation5], %s437_s11 }
  0x97   : > { %v435_v42 = vadd.f32 %v434_v41, %v429_v38  ;;  %s462_s25 = sld [smem:[#allocation4 + %s461_s16]]  ;;  %v439_v44 = vld [vmem:[%s438_s27] sm:$0x1]  ;;  %s443_s28 = scalar_lea.vmem [#allocation5], %s442_s24 }
  0x98   : > { %v421_v43 = vadd.f32 %v420_v39, %v416_v40  ;;  %v444_v46 = vld [vmem:[%s443_s28] sm:$0x1]  ;;  %s448_s1 = scalar_lea.vmem [#allocation5], %s447_s9  ;;  %s112_s18 = sand.u32 1, %s771_s13  }
  0x99   : > { %v440_v45 = vadd.f32 %v439_v44, %v435_v42  ;;  %v449_v47 = vld [vmem:[%s448_s1] sm:$0x1]  ;;  %s612_s11 = sshll.u32 %s112_s18, 3  ;;  %s623_s10 = sshll.u32 %s825_s0, 7 }
  0x9a   : > { %422 = vst [vmem:[#allocation2 + $0x6] sm:$0x1] %v421_v43  ;;  %s453_s30 = scalar_lea.vmem [#allocation5], %s452_s4  ;;  %s114_s24 = scalar_lea.vmem [#allocation8], %s612_s11 }
  0x9b   : > { %v445_v48 = vadd.f32 %v444_v46, %v440_v45  ;;  %v454_v49 = vld [vmem:[%s453_s30] sm:$0x1]  ;;  %s458_s8 = scalar_lea.vmem [#allocation5], %s457_s6  ;;  %s484_s23 = sshll.u32 %s114_s24, 4  ;;  %s485_s23 = int_to_ptr.vmem [resolvable:$true] %s484_s23 }
  0x9c   : > { %v459_v51 = vld [vmem:[%s458_s8] sm:$0x1]  ;;  %s482_s19 = scalar_lea.hbm %s1003_s2, %s623_s10  ;;  %s471_s7 = scalar_lea.sflag [#allocation7], %s112_s18 }
  0x9d   : > { %v450_v50 = vadd.f32 %v449_v47, %v445_v48  ;;  %s463_s26 = scalar_lea.vmem [#allocation5], %s462_s25  ;;  %s713_s5 = scalar_lea.vmem %s485_s23, 128 }
  0x9e   : > { %v464_v53 = vld [vmem:[%s463_s26] sm:$0x1]  ;;  %p714_p1 = scmp.ne.s32.totalorder %s485_s23, %s713_s5  ;;  %s785_s4 = smov [#allocation8]  }
  0x9f   : > { %v455_v52 = vadd.f32 %v454_v49, %v450_v50  ;;  %s717_s29 = sshll.u32 %s785_s4, 4  ;;  %s718_s29 = int_to_ptr.vmem [resolvable:$false] %s717_s29 }
  0xa0   : > { %p715_p2 = pnand %p714_p1, %p842_p5  ;;  %s719_s6 = scalar_lea.vmem %s718_s29, 256 }
  0xa1   : > { %v460_v54 = vadd.f32 %v459_v51, %v455_v52  ;;  %p720_p4 = scmp.lt.s32.totalorder %s485_s23, %s718_s29  ;;  %p721_p7 = scmp.lt.s32.totalorder %s719_s6, %s713_s5 }
  0xa2   : > { %p716_p3 = pneg %p715_p2 }
  0xa3   : > { %v465_v55 = vadd.f32 %v464_v53, %v460_v54  ;;  %p722_p6 = por %p721_p7, %p720_p4 }
  0xa5   : > { %466 = vst [vmem:[#allocation2 + $0x7] sm:$0x1] %v465_v55  ;;  %p723_p8 = pnand %p722_p6, %p716_p3 }
  0xac   : > { %v467_v56 = vld [vmem:[#allocation2] sm:$0xff] }
  0xad   : > { %v468_v57 = vmul.f32 0.125, %v467_v56 }
  0xaf   : > { %469 = vst [vmem:[%s114_s24] sm:$0xff] %v468_v57 }
  0xb0   : > { %726 = shalt.err (!%p723_p8)
}
  0xb1   : > { %s727_s0 = scalar_lea.hbm %s482_s19, 128  ;;  %s731_s27 = scalar_lea.hbm %s1003_s2, 256 }
  0xb2   : > { %p728_p10 = scmp.ne.s32.totalorder %s482_s19, %s727_s0  ;;  %p732_p12 = scmp.lt.s32.totalorder %s482_s19, %s1003_s2 }
  0xb3   : > { %p733_p13 = scmp.lt.s32.totalorder %s731_s27, %s727_s0 }
  0xb4   : > { %p729_p9 = pnand %p728_p10, %p842_p5 }
  0xb5   : > { %p734_p0 = por %p733_p13, %p732_p12 }
  0xb6   : > { %p730_p11 = pneg %p729_p9 }
  0xb8   : > { %p735_p1 = pnand %p734_p0, %p730_p11 }
  0xba   : > { %738 = shalt.err (!%p735_p1)
}
  0xbb   : > { %630 = dma.vmem_to_hbm [thread:$0]  (%p842_p5), %s485_s23, 128, %s482_s19, %s471_s7  }
  0xbc PF: > { %p642_p2 = scmp.ge.s32.totalorder %s779_s15, 2  ;;  %s496_s30 = sand.u32 1, %s767_s12  }
  0xbd   : > { %p1015_p3 = scmp.ne.s32.totalorder %s1008_s22, 0  ;;  %s497_s8 = scalar_lea.sflag [#allocation7], %s496_s30 }
  0xbf   : > { %p637_p4 = pnand %p642_p2, %p1015_p3 }
  0xc1   : > { %p638_p7 = pneg %p637_p4 }
  0xc3   : > { %762 = dma.done.wait (%p638_p7), %s497_s8, 128  }
  0xc4   : > { %764 = vsyncadd (%p638_p7), %s497_s8, 4294967168  ;;  %p17_p6 = scmp.ge.s32.totalorder %s829_s17, 4   ;;  %s1016_s12 = smov %s771_s13 }
  0xc5   : > { %s1017_s13 = smov %s775_s14  ;;  %s1018_s14 = smov %s840_s20 }
  0xc6   : > { %s1019_s15 = smov %s829_s17  ;;  %19 = sbr.rel (!%p17_p6) target bundleno = 10 (0xa), region = 125 }
  0xcb   :  { %502 = vsyncpa [#allocation6], 1 }
  0xcc   :  { %504 = vsyncpa [#allocation6 + $0x1], 1 }
  0xcd   :  { %505 = vsyncpa [#allocation7], 1 }
  0xce   :  { %507 = vsyncpa [#allocation7 + $0x1], 1 }

</bundles_post_ra>
